<compile_context>
chip_gen: v6e
topology: v6e:2x2x1
jax: 0.10.0
libtpu: 0.0.40
codegen_flags: <defaults>
</compile_context>

<pallas_src>
import functools

import jax
import jax.numpy as jnp
from jax.experimental import pallas as pl
from jax.experimental.pallas import tpu as pltpu


# --------------------------------------------------------------------------- utils
def _round_up(n, m):
    return ((n + m - 1) // m) * m


def _cdiv(a, b):
    return -(-a // b)


def _pad2(w, rows, cols):
    r, c = w.shape
    return jnp.pad(w, ((0, rows - r), (0, cols - c)))


def _row(a, width):
    a = a.reshape(1, -1).astype(jnp.float32)
    return jnp.pad(a, ((0, 0), (0, width - a.shape[1])))


# --------------------------------------------------------------------------- kernel
def _mapper_kernel(
    x_ref,                                    # (tile_b, D+T) = [x_a | emb]
    # block-diagonal fused first weight + shape_encoder layer-1 bias
    w_in_ref, bs1_ref,
    # shape_encoder layer 2
    ws2_ref, bs2_ref,
    # shape_fts half of fused editor/mag first layer (BN folded) + its bias
    w1t_ref, b1_ref,
    # editor tail (BN folded into weights/biases), we4 padded lane-dense
    we2_ref, be2_ref, we3_ref, be3_ref, we4_ref,
    # mag_mlp tail
    wm2_ref, bm2_ref, wm3_ref, bm3_ref, wm4_ref, bm4_ref,
    # output (tile_b, DP) lane-dense
    out_ref,
    *, dp, p1,
):
    f32 = jnp.float32

    def mm(x, w_ref):
        w = w_ref[...]
        # cast LHS to the (bf16) weight dtype only at the MXU boundary
        return jnp.dot(x.astype(w.dtype), w, preferred_element_type=f32)

    def relu(v):
        return jnp.maximum(v, 0.0)

    x = x_ref[...].astype(f32)

    # ---- fused first matmul: [shape-enc layer-1 | emb half of editor/mag layer-1] ----
    y = mm(x, w_in_ref)                       # (tile_b, dp + p1 + 256)
    h = relu(y[:, :dp] + bs1_ref[...])        # shape_encoder hidden (Dropout = id)
    sfts = mm(h, ws2_ref) + bs2_ref[...]      # shape_fts (padded cols are 0)

    # ---- editor/mag first layer: concat replaced by split weights + reused y tail ----
    z = relu(mm(sfts, w1t_ref) + y[:, dp:] + b1_ref[...])
    e = z[:, :p1]                             # editor hidden (BN folded, padded)
    m = z[:, p1:]                             # mag hidden (width 256)

    # ---- editor tail: (Lin+BN+ReLU) x2 -> Lin (no bias), lane-dense output ----
    e = relu(mm(e, we2_ref) + be2_ref[...])
    e = relu(mm(e, we3_ref) + be3_ref[...])
    edit = mm(e, we4_ref)                     # (tile_b, dp); cols >= D are zero

    # ---- F.normalize(edit, dim=1): eps on squared norm, rsqrt on the EUP ----
    ssq = jnp.sum(edit * edit, axis=1, keepdims=True)
    edit = edit * jax.lax.rsqrt(jnp.maximum(ssq, 1e-24))

    # ---- mag_mlp tail: (Lin -> ReLU) x2 -> width-1 head as VPU reduce -> ReLU ----
    m = relu(mm(m, wm2_ref) + bm2_ref[...])
    m = relu(mm(m, wm3_ref) + bm3_ref[...])
    mag = relu(jnp.sum(m * wm4_ref[...], axis=1, keepdims=True) + bm4_ref[...])

    out_ref[...] = (edit * mag).astype(out_ref.dtype)


# --------------------------------------------------------------------------- params
def init_params(key, shape_latent_dim, text_embed_dim, bottleneck_dim):
    """Raw (PyTorch-layout) parameters: W is (in, out), biases are (out,)."""
    D, T, BND = shape_latent_dim, text_embed_dim, bottleneck_dim
    in_dim = D + T
    keys = iter(jax.random.split(key, 40))

    def w(i, o, s=0.08):
        return (s * jax.random.normal(next(keys), (i, o))).astype(jnp.float32)

    def b(o, s=0.02):
        return (s * jax.random.normal(next(keys), (o,))).astype(jnp.float32)

    def bn(o):
        gamma = 1.0 + 0.1 * jax.random.normal(next(keys), (o,))
        beta = 0.05 * jax.random.normal(next(keys), (o,))
        mean = 0.02 * jax.random.normal(next(keys), (o,))
        var = 1.0 + 0.1 * jax.random.uniform(next(keys), (o,))
        return (gamma.astype(jnp.float32), beta.astype(jnp.float32),
                mean.astype(jnp.float32), var.astype(jnp.float32))

    return {
        "ws1": w(D, D), "bs1": b(D), "ws2": w(D, D), "bs2": b(D),
        "we1": w(in_dim, BND), "be1": b(BND), "bn1": bn(BND),
        "we2": w(BND, D), "be2": b(D), "bn2": bn(D),
        "we3": w(D, D), "be3": b(D), "bn3": bn(D),
        "we4": w(D, D),
        "wm1": w(in_dim, 256), "bm1": b(256),
        "wm2": w(256, 128), "bm2": b(128),
        "wm3": w(128, 64), "bm3": b(64),
        "wm4": w(64, 1), "bm4": b(1),
    }


def prepare_params(raw, shape_latent_dim, text_embed_dim, bottleneck_dim,
                   weight_dtype=jnp.bfloat16):
    """Host prep: fold BN, block-diag fuse first layers, pad to 128 lanes, cast."""
    D, T, BND = shape_latent_dim, text_embed_dim, bottleneck_dim
    DP = _round_up(D, 128)       # padded shape-latent / output width (lane dense)
    P1 = _round_up(BND, 128)     # padded editor bottleneck width
    MAG1 = 256                   # mag layer-1 width (already lane aligned)
    M3P = _round_up(64, 128)     # mag layer-3 width padded

    def fold_bn(w, b, bn_params, eps=1e-5):
        g, bt, mu, var = bn_params
        s = g / jnp.sqrt(var + eps)
        return w * s[None, :], b * s + (bt - mu * s)

    wd = lambda a: a.astype(weight_dtype)

    # editor layer 1 (BN folded) and mag layer 1, to be row-split by [shape_fts | emb]
    we1, be1 = fold_bn(raw["we1"], raw["be1"], raw["bn1"])      # (D+T, BND)
    wm1, bm1 = raw["wm1"], raw["bm1"]                           # (D+T, 256)

    # Block-diagonal fused input weight over xcat = [x_a | emb]:
    #   cols [0:DP]        <- shape_encoder layer-1 (x_a rows only)
    #   cols [DP:DP+P1]    <- editor layer-1 emb-half (BN folded)
    #   cols [DP+P1: ]     <- mag layer-1 emb-half
    zcols = P1 + MAG1
    w_in = jnp.zeros((D + T, DP + zcols), jnp.float32)
    w_in = w_in.at[:D, :DP].set(_pad2(raw["ws1"], D, DP))
    w_in = w_in.at[D:, DP:DP + P1].set(_pad2(we1[D:], T, P1))
    w_in = w_in.at[D:, DP + P1:].set(wm1[D:])

    bs1 = _row(raw["bs1"], DP)
    ws2 = _pad2(raw["ws2"], DP, DP)
    bs2 = _row(raw["bs2"], DP)

    # shape_fts halves of editor/mag first layers, fused along the output dim
    # (padded columns are zero -> exact through ReLU).
    w1t = jnp.concatenate([_pad2(we1[:D], DP, P1), _pad2(wm1[:D], DP, MAG1)], axis=1)
    b1 = jnp.concatenate([_row(be1, P1), _row(bm1, MAG1)], axis=1)

    # editor tail (BN folded); we4 padded to a lane-dense (DP, DP) output
    we2, be2 = fold_bn(raw["we2"], raw["be2"], raw["bn2"])      # (BND, D)
    we3, be3 = fold_bn(raw["we3"], raw["be3"], raw["bn3"])      # (D, D)
    we2, be2 = _pad2(we2, P1, DP), _row(be2, DP)
    we3, be3 = _pad2(we3, DP, DP), _row(be3, DP)
    we4 = _pad2(raw["we4"], DP, DP)

    # mag tail
    wm2, bm2 = _pad2(raw["wm2"], MAG1, 128), _row(raw["bm2"], 128)
    wm3, bm3 = _pad2(raw["wm3"], 128, M3P), _row(raw["bm3"], M3P)
    wm4 = _row(raw["wm4"].reshape(-1), M3P)                     # (1,128) VPU head row
    bm4 = raw["bm4"].reshape(1, 1).astype(jnp.float32)

    prm = dict(
        w_in=wd(w_in), bs1=bs1, ws2=wd(ws2), bs2=bs2,
        w1t=wd(w1t), b1=b1,
        we2=wd(we2), be2=be2, we3=wd(we3), be3=be3, we4=wd(we4),
        wm2=wd(wm2), bm2=bm2, wm3=wd(wm3), bm3=bm3,
        wm4=wm4, bm4=bm4,
    )
    return prm, DP, P1


# --------------------------------------------------------------------------- wrapper
_WEIGHT_ORDER = ["w_in", "bs1", "ws2", "bs2", "w1t", "b1",
                 "we2", "be2", "we3", "be3", "we4",
                 "wm2", "bm2", "wm3", "bm3", "wm4", "bm4"]


def mlp_latent_mapper_forward(x_a, embed_ab, prm, dp, p1, *, block_rows=1024):
    B, D = x_a.shape
    T = embed_ab.shape[1]

    # torch.cat([x_a, embed_ab], dim=1) done once on the host -> single input stream
    xcat = jnp.concatenate([x_a, embed_ab], axis=1).astype(jnp.float32)

    b8 = _round_up(B, 8)
    # large tiles to amortize per-grid-step overhead, but keep >= 2 grid steps
    # when possible so ("parallel",) splits the batch across v7x's 2 TensorCores
    tile_b = max(8, min(_round_up(block_rows, 8), _round_up(_cdiv(b8, 2), 8)))
    b_pad = _round_up(b8, tile_b)
    if b_pad != B:
        xcat = jnp.pad(xcat, ((0, b_pad - B), (0, 0)))

    weights = [prm[k] for k in _WEIGHT_ORDER]

    # constant index_map -> weights stay resident in VMEM across the batch grid
    full_spec = lambda a: pl.BlockSpec(a.shape, lambda i: (0, 0))

    out = pl.pallas_call(
        functools.partial(_mapper_kernel, dp=dp, p1=p1),
        out_shape=jax.ShapeDtypeStruct((b_pad, dp), jnp.float32),  # lane-dense (128)
        grid=(b_pad // tile_b,),
        in_specs=[pl.BlockSpec((tile_b, D + T), lambda i: (i, 0))]
                 + [full_spec(w) for w in weights],
        out_specs=pl.BlockSpec((tile_b, dp), lambda i: (i, 0)),
        compiler_params=pltpu.CompilerParams(
            dimension_semantics=("parallel",),     # megacore split on v7x
            vmem_limit_bytes=32 * 1024 * 1024),
    )(xcat, *weights)
    return out[:B, :D]


# --------------------------------------------------------------------------- reference
def _reference_forward(x_a, emb, raw):
    hp = jax.lax.Precision.HIGHEST
    lin = lambda x, w, b=None: jnp.dot(x, w, precision=hp) + (0.0 if b is None else b)
    relu = lambda v: jnp.maximum(v, 0.0)
    bn = lambda x, p: (x - p[2]) / jnp.sqrt(p[3] + 1e-5) * p[0] + p[1]

    h = relu(lin(x_a, raw["ws1"], raw["bs1"]))
    sfts = lin(h, raw["ws2"], raw["bs2"])
    x = jnp.concatenate([sfts, emb], axis=1)

    e = relu(bn(lin(x, raw["we1"], raw["be1"]), raw["bn1"]))
    e = relu(bn(lin(e, raw["we2"], raw["be2"]), raw["bn2"]))
    e = relu(bn(lin(e, raw["we3"], raw["be3"]), raw["bn3"]))
    edit = lin(e, raw["we4"])
    nrm = jnp.sqrt(jnp.sum(edit * edit, axis=1, keepdims=True))
    edit = edit / jnp.maximum(nrm, 1e-12)

    m = relu(lin(x, raw["wm1"], raw["bm1"]))
    m = relu(lin(m, raw["wm2"], raw["bm2"]))
    m = relu(lin(m, raw["wm3"], raw["bm3"]))
    mag = relu(lin(m, raw["wm4"], raw["bm4"]))
    return edit * mag


# --------------------------------------------------------------------------- main
if __name__ == "__main__":
    shape_latent_dim = 32
    text_embed_dim = 32
    bottleneck_dim = 64   # constructor arg; kept small for the example
    batch = 2

    key = jax.random.PRNGKey(0)
    k_x, k_e, k_p, k_x2, k_e2 = jax.random.split(key, 5)

    raw = init_params(k_p, shape_latent_dim, text_embed_dim, bottleneck_dim)
    # bf16 weights (default): ~3x fewer MXU passes, half the weight VMEM/DMA;
    # matmuls still accumulate in f32 and all elementwise math stays f32.
    prm, dp, p1 = prepare_params(raw, shape_latent_dim, text_embed_dim,
                                 bottleneck_dim, weight_dtype=jnp.bfloat16)

    # ---- small-batch case (single grid step, fully padded tile) ----
    x_a = jax.random.normal(k_x, (batch, shape_latent_dim), jnp.float32)
    embed_ab = jax.random.normal(k_e, (batch, text_embed_dim), jnp.float32)
    out = jax.block_until_ready(mlp_latent_mapper_forward(x_a, embed_ab, prm, dp, p1))
    assert out.shape == (batch, shape_latent_dim), out.shape
    assert jnp.all(jnp.isfinite(out)), "non-finite output"
    ref = _reference_forward(x_a, embed_ab, raw)
    max_diff = float(jnp.max(jnp.abs(out - ref)))
    assert max_diff < 1e-2, f"kernel/reference mismatch (B=2): max |diff| = {max_diff}"

    # ---- multi-step case: B not a multiple of the tile, >=2 grid steps (megacore) ----
    batch2 = 300
    x_a2 = jax.random.normal(k_x2, (batch2, shape_latent_dim), jnp.float32)
    embed_ab2 = jax.random.normal(k_e2, (batch2, text_embed_dim), jnp.float32)
    out2 = jax.block_until_ready(mlp_latent_mapper_forward(x_a2, embed_ab2, prm, dp, p1))
    assert out2.shape == (batch2, shape_latent_dim), out2.shape
    assert jnp.all(jnp.isfinite(out2)), "non-finite output (B=300)"
    ref2 = _reference_forward(x_a2, embed_ab2, raw)
    max_diff2 = float(jnp.max(jnp.abs(out2 - ref2)))
    assert max_diff2 < 1e-2, f"kernel/reference mismatch (B=300): max |diff| = {max_diff2}"

    print("KERNEL_OK")
</pallas_src>

<mosaic_0001>
module attributes {stable_mosaic.version = 11 : i64} {
  func.func @_mapper_kernel(%arg0: i32, %arg1: memref<8x64xf32, #tpu.memory_space<vmem>>, %arg2: memref<64x512xbf16, #tpu.memory_space<vmem>>, %arg3: memref<1x128xf32, #tpu.memory_space<vmem>>, %arg4: memref<128x128xbf16, #tpu.memory_space<vmem>>, %arg5: memref<1x128xf32, #tpu.memory_space<vmem>>, %arg6: memref<128x384xbf16, #tpu.memory_space<vmem>>, %arg7: memref<1x384xf32, #tpu.memory_space<vmem>>, %arg8: memref<128x128xbf16, #tpu.memory_space<vmem>>, %arg9: memref<1x128xf32, #tpu.memory_space<vmem>>, %arg10: memref<128x128xbf16, #tpu.memory_space<vmem>>, %arg11: memref<1x128xf32, #tpu.memory_space<vmem>>, %arg12: memref<128x128xbf16, #tpu.memory_space<vmem>>, %arg13: memref<256x128xbf16, #tpu.memory_space<vmem>>, %arg14: memref<1x128xf32, #tpu.memory_space<vmem>>, %arg15: memref<128x128xbf16, #tpu.memory_space<vmem>>, %arg16: memref<1x128xf32, #tpu.memory_space<vmem>>, %arg17: memref<1x128xf32, #tpu.memory_space<vmem>>, %arg18: memref<1x1xf32, #tpu.memory_space<vmem>>, %arg19: memref<8x128xf32, #tpu.memory_space<vmem>>) attributes {dimension_semantics = [#tpu.dimension_semantics<parallel>], iteration_bounds = array<i64: 1>, scalar_prefetch = 0 : i64, scratch_operands = 0 : i64, tpu.core_type = #tpu.core_type<tc>, window_params = [{transform_indices = @transform_0, window_bounds = array<i64: 8, 64>}, {pipeline_mode = #tpu.pipeline_mode<synchronous>, transform_indices = @transform_1, window_bounds = array<i64: 64, 512>}, {pipeline_mode = #tpu.pipeline_mode<synchronous>, transform_indices = @transform_2, window_bounds = array<i64: 1, 128>}, {pipeline_mode = #tpu.pipeline_mode<synchronous>, transform_indices = @transform_3, window_bounds = array<i64: 128, 128>}, {pipeline_mode = #tpu.pipeline_mode<synchronous>, transform_indices = @transform_4, window_bounds = array<i64: 1, 128>}, {pipeline_mode = #tpu.pipeline_mode<synchronous>, transform_indices = @transform_5, window_bounds = array<i64: 128, 384>}, {pipeline_mode = #tpu.pipeline_mode<synchronous>, transform_indices = @transform_6, window_bounds = array<i64: 1, 384>}, {pipeline_mode = #tpu.pipeline_mode<synchronous>, transform_indices = @transform_7, window_bounds = array<i64: 128, 128>}, {pipeline_mode = #tpu.pipeline_mode<synchronous>, transform_indices = @transform_8, window_bounds = array<i64: 1, 128>}, {pipeline_mode = #tpu.pipeline_mode<synchronous>, transform_indices = @transform_9, window_bounds = array<i64: 128, 128>}, {pipeline_mode = #tpu.pipeline_mode<synchronous>, transform_indices = @transform_10, window_bounds = array<i64: 1, 128>}, {pipeline_mode = #tpu.pipeline_mode<synchronous>, transform_indices = @transform_11, window_bounds = array<i64: 128, 128>}, {pipeline_mode = #tpu.pipeline_mode<synchronous>, transform_indices = @transform_12, window_bounds = array<i64: 256, 128>}, {pipeline_mode = #tpu.pipeline_mode<synchronous>, transform_indices = @transform_13, window_bounds = array<i64: 1, 128>}, {pipeline_mode = #tpu.pipeline_mode<synchronous>, transform_indices = @transform_14, window_bounds = array<i64: 128, 128>}, {pipeline_mode = #tpu.pipeline_mode<synchronous>, transform_indices = @transform_15, window_bounds = array<i64: 1, 128>}, {pipeline_mode = #tpu.pipeline_mode<synchronous>, transform_indices = @transform_16, window_bounds = array<i64: 1, 128>}, {pipeline_mode = #tpu.pipeline_mode<synchronous>, transform_indices = @transform_17, window_bounds = array<i64: 1, 1>}, {transform_indices = @transform_18, window_bounds = array<i64: 8, 128>}]} {
    %c0 = arith.constant 0 : index
    %c0_0 = arith.constant 0 : index
    %0 = vector.load %arg1[%c0, %c0_0] : memref<8x64xf32, #tpu.memory_space<vmem>>, vector<8x64xf32>
    %c0_1 = arith.constant 0 : index
    %c0_2 = arith.constant 0 : index
    %1 = vector.load %arg2[%c0_1, %c0_2] : memref<64x512xbf16, #tpu.memory_space<vmem>>, vector<64x512xbf16>
    %2 = arith.truncf %0 : vector<8x64xf32> to vector<8x64xbf16>
    %cst = arith.constant dense<0.000000e+00> : vector<8x512xf32>
    %3 = tpu.matmul %2, %1, %cst {dimension_numbers = #tpu.dot_dimension_numbers<[1], [0], [0], [1], [0, 0, 1, 1], [], []>} : vector<8x64xbf16>, vector<64x512xbf16>, vector<8x512xf32> -> vector<8x512xf32>
    %4 = vector.extract_strided_slice %3 {offsets = [0, 0], sizes = [8, 128], strides = [1, 1]} : vector<8x512xf32> to vector<8x128xf32>
    %c0_3 = arith.constant 0 : index
    %c0_4 = arith.constant 0 : index
    %5 = vector.load %arg3[%c0_3, %c0_4] : memref<1x128xf32, #tpu.memory_space<vmem>>, vector<1x128xf32>
    %6 = vector.broadcast %5 : vector<1x128xf32> to vector<8x128xf32>
    %7 = arith.addf %4, %6 : vector<8x128xf32>
    %cst_5 = arith.constant 0.000000e+00 : f32
    %8 = vector.broadcast %cst_5 : f32 to vector<8x128xf32>
    %9 = arith.maximumf %7, %8 : vector<8x128xf32>
    %c0_6 = arith.constant 0 : index
    %c0_7 = arith.constant 0 : index
    %10 = vector.load %arg4[%c0_6, %c0_7] : memref<128x128xbf16, #tpu.memory_space<vmem>>, vector<128x128xbf16>
    %11 = arith.truncf %9 : vector<8x128xf32> to vector<8x128xbf16>
    %cst_8 = arith.constant dense<0.000000e+00> : vector<8x128xf32>
    %12 = tpu.matmul %11, %10, %cst_8 {dimension_numbers = #tpu.dot_dimension_numbers<[1], [0], [0], [1], [0, 0, 1, 1], [], []>} : vector<8x128xbf16>, vector<128x128xbf16>, vector<8x128xf32> -> vector<8x128xf32>
    %c0_9 = arith.constant 0 : index
    %c0_10 = arith.constant 0 : index
    %13 = vector.load %arg5[%c0_9, %c0_10] : memref<1x128xf32, #tpu.memory_space<vmem>>, vector<1x128xf32>
    %14 = vector.broadcast %13 : vector<1x128xf32> to vector<8x128xf32>
    %15 = arith.addf %12, %14 : vector<8x128xf32>
    %c0_11 = arith.constant 0 : index
    %c0_12 = arith.constant 0 : index
    %16 = vector.load %arg6[%c0_11, %c0_12] : memref<128x384xbf16, #tpu.memory_space<vmem>>, vector<128x384xbf16>
    %17 = arith.truncf %15 : vector<8x128xf32> to vector<8x128xbf16>
    %cst_13 = arith.constant dense<0.000000e+00> : vector<8x384xf32>
    %18 = tpu.matmul %17, %16, %cst_13 {dimension_numbers = #tpu.dot_dimension_numbers<[1], [0], [0], [1], [0, 0, 1, 1], [], []>} : vector<8x128xbf16>, vector<128x384xbf16>, vector<8x384xf32> -> vector<8x384xf32>
    %19 = vector.extract_strided_slice %3 {offsets = [0, 128], sizes = [8, 384], strides = [1, 1]} : vector<8x512xf32> to vector<8x384xf32>
    %20 = arith.addf %18, %19 : vector<8x384xf32>
    %c0_14 = arith.constant 0 : index
    %c0_15 = arith.constant 0 : index
    %21 = vector.load %arg7[%c0_14, %c0_15] : memref<1x384xf32, #tpu.memory_space<vmem>>, vector<1x384xf32>
    %22 = vector.broadcast %21 : vector<1x384xf32> to vector<8x384xf32>
    %23 = arith.addf %20, %22 : vector<8x384xf32>
    %cst_16 = arith.constant 0.000000e+00 : f32
    %24 = vector.broadcast %cst_16 : f32 to vector<8x384xf32>
    %25 = arith.maximumf %23, %24 : vector<8x384xf32>
    %26 = vector.extract_strided_slice %25 {offsets = [0, 0], sizes = [8, 128], strides = [1, 1]} : vector<8x384xf32> to vector<8x128xf32>
    %27 = vector.extract_strided_slice %25 {offsets = [0, 128], sizes = [8, 256], strides = [1, 1]} : vector<8x384xf32> to vector<8x256xf32>
    %c0_17 = arith.constant 0 : index
    %c0_18 = arith.constant 0 : index
    %28 = vector.load %arg8[%c0_17, %c0_18] : memref<128x128xbf16, #tpu.memory_space<vmem>>, vector<128x128xbf16>
    %29 = arith.truncf %26 : vector<8x128xf32> to vector<8x128xbf16>
    %cst_19 = arith.constant dense<0.000000e+00> : vector<8x128xf32>
    %30 = tpu.matmul %29, %28, %cst_19 {dimension_numbers = #tpu.dot_dimension_numbers<[1], [0], [0], [1], [0, 0, 1, 1], [], []>} : vector<8x128xbf16>, vector<128x128xbf16>, vector<8x128xf32> -> vector<8x128xf32>
    %c0_20 = arith.constant 0 : index
    %c0_21 = arith.constant 0 : index
    %31 = vector.load %arg9[%c0_20, %c0_21] : memref<1x128xf32, #tpu.memory_space<vmem>>, vector<1x128xf32>
    %32 = vector.broadcast %31 : vector<1x128xf32> to vector<8x128xf32>
    %33 = arith.addf %30, %32 : vector<8x128xf32>
    %cst_22 = arith.constant 0.000000e+00 : f32
    %34 = vector.broadcast %cst_22 : f32 to vector<8x128xf32>
    %35 = arith.maximumf %33, %34 : vector<8x128xf32>
    %c0_23 = arith.constant 0 : index
    %c0_24 = arith.constant 0 : index
    %36 = vector.load %arg10[%c0_23, %c0_24] : memref<128x128xbf16, #tpu.memory_space<vmem>>, vector<128x128xbf16>
    %37 = arith.truncf %35 : vector<8x128xf32> to vector<8x128xbf16>
    %cst_25 = arith.constant dense<0.000000e+00> : vector<8x128xf32>
    %38 = tpu.matmul %37, %36, %cst_25 {dimension_numbers = #tpu.dot_dimension_numbers<[1], [0], [0], [1], [0, 0, 1, 1], [], []>} : vector<8x128xbf16>, vector<128x128xbf16>, vector<8x128xf32> -> vector<8x128xf32>
    %c0_26 = arith.constant 0 : index
    %c0_27 = arith.constant 0 : index
    %39 = vector.load %arg11[%c0_26, %c0_27] : memref<1x128xf32, #tpu.memory_space<vmem>>, vector<1x128xf32>
    %40 = vector.broadcast %39 : vector<1x128xf32> to vector<8x128xf32>
    %41 = arith.addf %38, %40 : vector<8x128xf32>
    %cst_28 = arith.constant 0.000000e+00 : f32
    %42 = vector.broadcast %cst_28 : f32 to vector<8x128xf32>
    %43 = arith.maximumf %41, %42 : vector<8x128xf32>
    %c0_29 = arith.constant 0 : index
    %c0_30 = arith.constant 0 : index
    %44 = vector.load %arg12[%c0_29, %c0_30] : memref<128x128xbf16, #tpu.memory_space<vmem>>, vector<128x128xbf16>
    %45 = arith.truncf %43 : vector<8x128xf32> to vector<8x128xbf16>
    %cst_31 = arith.constant dense<0.000000e+00> : vector<8x128xf32>
    %46 = tpu.matmul %45, %44, %cst_31 {dimension_numbers = #tpu.dot_dimension_numbers<[1], [0], [0], [1], [0, 0, 1, 1], [], []>} : vector<8x128xbf16>, vector<128x128xbf16>, vector<8x128xf32> -> vector<8x128xf32>
    %47 = arith.mulf %46, %46 : vector<8x128xf32>
    %cst_32 = arith.constant dense<0.000000e+00> : vector<8xf32>
    %48 = vector.multi_reduction <add>, %47, %cst_32 [1] : vector<8x128xf32> to vector<8xf32>
    %49 = vector.shape_cast %48 : vector<8xf32> to vector<8x1xf32>
    %cst_33 = arith.constant 1.000000e-24 : f32
    %50 = vector.broadcast %cst_33 : f32 to vector<8x1xf32>
    %51 = arith.maximumf %49, %50 : vector<8x1xf32>
    %52 = math.rsqrt %51 : vector<8x1xf32>
    %53 = vector.broadcast %52 : vector<8x1xf32> to vector<8x128xf32>
    %54 = arith.mulf %46, %53 : vector<8x128xf32>
    %c0_34 = arith.constant 0 : index
    %c0_35 = arith.constant 0 : index
    %55 = vector.load %arg13[%c0_34, %c0_35] : memref<256x128xbf16, #tpu.memory_space<vmem>>, vector<256x128xbf16>
    %56 = arith.truncf %27 : vector<8x256xf32> to vector<8x256xbf16>
    %cst_36 = arith.constant dense<0.000000e+00> : vector<8x128xf32>
    %57 = tpu.matmul %56, %55, %cst_36 {dimension_numbers = #tpu.dot_dimension_numbers<[1], [0], [0], [1], [0, 0, 1, 1], [], []>} : vector<8x256xbf16>, vector<256x128xbf16>, vector<8x128xf32> -> vector<8x128xf32>
    %c0_37 = arith.constant 0 : index
    %c0_38 = arith.constant 0 : index
    %58 = vector.load %arg14[%c0_37, %c0_38] : memref<1x128xf32, #tpu.memory_space<vmem>>, vector<1x128xf32>
    %59 = vector.broadcast %58 : vector<1x128xf32> to vector<8x128xf32>
    %60 = arith.addf %57, %59 : vector<8x128xf32>
    %cst_39 = arith.constant 0.000000e+00 : f32
    %61 = vector.broadcast %cst_39 : f32 to vector<8x128xf32>
    %62 = arith.maximumf %60, %61 : vector<8x128xf32>
    %c0_40 = arith.constant 0 : index
    %c0_41 = arith.constant 0 : index
    %63 = vector.load %arg15[%c0_40, %c0_41] : memref<128x128xbf16, #tpu.memory_space<vmem>>, vector<128x128xbf16>
    %64 = arith.truncf %62 : vector<8x128xf32> to vector<8x128xbf16>
    %cst_42 = arith.constant dense<0.000000e+00> : vector<8x128xf32>
    %65 = tpu.matmul %64, %63, %cst_42 {dimension_numbers = #tpu.dot_dimension_numbers<[1], [0], [0], [1], [0, 0, 1, 1], [], []>} : vector<8x128xbf16>, vector<128x128xbf16>, vector<8x128xf32> -> vector<8x128xf32>
    %c0_43 = arith.constant 0 : index
    %c0_44 = arith.constant 0 : index
    %66 = vector.load %arg16[%c0_43, %c0_44] : memref<1x128xf32, #tpu.memory_space<vmem>>, vector<1x128xf32>
    %67 = vector.broadcast %66 : vector<1x128xf32> to vector<8x128xf32>
    %68 = arith.addf %65, %67 : vector<8x128xf32>
    %cst_45 = arith.constant 0.000000e+00 : f32
    %69 = vector.broadcast %cst_45 : f32 to vector<8x128xf32>
    %70 = arith.maximumf %68, %69 : vector<8x128xf32>
    %c0_46 = arith.constant 0 : index
    %c0_47 = arith.constant 0 : index
    %71 = vector.load %arg17[%c0_46, %c0_47] : memref<1x128xf32, #tpu.memory_space<vmem>>, vector<1x128xf32>
    %72 = vector.broadcast %71 : vector<1x128xf32> to vector<8x128xf32>
    %73 = arith.mulf %70, %72 : vector<8x128xf32>
    %cst_48 = arith.constant dense<0.000000e+00> : vector<8xf32>
    %74 = vector.multi_reduction <add>, %73, %cst_48 [1] : vector<8x128xf32> to vector<8xf32>
    %75 = vector.shape_cast %74 : vector<8xf32> to vector<8x1xf32>
    %c0_49 = arith.constant 0 : index
    %c0_50 = arith.constant 0 : index
    %76 = vector.load %arg18[%c0_49, %c0_50] : memref<1x1xf32, #tpu.memory_space<vmem>>, vector<1x1xf32>
    %77 = vector.broadcast %76 : vector<1x1xf32> to vector<8x1xf32>
    %78 = arith.addf %75, %77 : vector<8x1xf32>
    %cst_51 = arith.constant 0.000000e+00 : f32
    %79 = vector.broadcast %cst_51 : f32 to vector<8x1xf32>
    %80 = arith.maximumf %78, %79 : vector<8x1xf32>
    %81 = vector.broadcast %80 : vector<8x1xf32> to vector<8x128xf32>
    %82 = arith.mulf %54, %81 : vector<8x128xf32>
    %c0_52 = arith.constant 0 : index
    %c0_53 = arith.constant 0 : index
    %83 = vector.load %arg19[%c0_52, %c0_53] : memref<8x128xf32, #tpu.memory_space<vmem>>, vector<8x128xf32>
    tpu.vector_store %arg19[%c0_52, %c0_53], %82 {strides = array<i32>} : memref<8x128xf32, #tpu.memory_space<vmem>>, vector<8x128xf32>,
    return
  }
  func.func @transform_0(%arg0: i32) -> (i32, i32) {
    %c0_i32 = arith.constant 0 : i32
    %c0_i32_0 = arith.constant 0 : i32
    return %arg0, %c0_i32 : i32, i32
  }
  func.func @transform_1(%arg0: i32) -> (i32, i32) {
    %c0_i32 = arith.constant 0 : i32
    %c0_i32_0 = arith.constant 0 : i32
    %c0_i32_1 = arith.constant 0 : i32
    return %c0_i32, %c0_i32_0 : i32, i32
  }
  func.func @transform_2(%arg0: i32) -> (i32, i32) {
    %c0_i32 = arith.constant 0 : i32
    %c0_i32_0 = arith.constant 0 : i32
    %c0_i32_1 = arith.constant 0 : i32
    return %c0_i32, %c0_i32_0 : i32, i32
  }
  func.func @transform_3(%arg0: i32) -> (i32, i32) {
    %c0_i32 = arith.constant 0 : i32
    %c0_i32_0 = arith.constant 0 : i32
    %c0_i32_1 = arith.constant 0 : i32
    return %c0_i32, %c0_i32_0 : i32, i32
  }
  func.func @transform_4(%arg0: i32) -> (i32, i32) {
    %c0_i32 = arith.constant 0 : i32
    %c0_i32_0 = arith.constant 0 : i32
    %c0_i32_1 = arith.constant 0 : i32
    return %c0_i32, %c0_i32_0 : i32, i32
  }
  func.func @transform_5(%arg0: i32) -> (i32, i32) {
    %c0_i32 = arith.constant 0 : i32
    %c0_i32_0 = arith.constant 0 : i32
    %c0_i32_1 = arith.constant 0 : i32
    return %c0_i32, %c0_i32_0 : i32, i32
  }
  func.func @transform_6(%arg0: i32) -> (i32, i32) {
    %c0_i32 = arith.constant 0 : i32
    %c0_i32_0 = arith.constant 0 : i32
    %c0_i32_1 = arith.constant 0 : i32
    return %c0_i32, %c0_i32_0 : i32, i32
  }
  func.func @transform_7(%arg0: i32) -> (i32, i32) {
    %c0_i32 = arith.constant 0 : i32
    %c0_i32_0 = arith.constant 0 : i32
    %c0_i32_1 = arith.constant 0 : i32
    return %c0_i32, %c0_i32_0 : i32, i32
  }
  func.func @transform_8(%arg0: i32) -> (i32, i32) {
    %c0_i32 = arith.constant 0 : i32
    %c0_i32_0 = arith.constant 0 : i32
    %c0_i32_1 = arith.constant 0 : i32
    return %c0_i32, %c0_i32_0 : i32, i32
  }
  func.func @transform_9(%arg0: i32) -> (i32, i32) {
    %c0_i32 = arith.constant 0 : i32
    %c0_i32_0 = arith.constant 0 : i32
    %c0_i32_1 = arith.constant 0 : i32
    return %c0_i32, %c0_i32_0 : i32, i32
  }
  func.func @transform_10(%arg0: i32) -> (i32, i32) {
    %c0_i32 = arith.constant 0 : i32
    %c0_i32_0 = arith.constant 0 : i32
    %c0_i32_1 = arith.constant 0 : i32
    return %c0_i32, %c0_i32_0 : i32, i32
  }
  func.func @transform_11(%arg0: i32) -> (i32, i32) {
    %c0_i32 = arith.constant 0 : i32
    %c0_i32_0 = arith.constant 0 : i32
    %c0_i32_1 = arith.constant 0 : i32
    return %c0_i32, %c0_i32_0 : i32, i32
  }
  func.func @transform_12(%arg0: i32) -> (i32, i32) {
    %c0_i32 = arith.constant 0 : i32
    %c0_i32_0 = arith.constant 0 : i32
    %c0_i32_1 = arith.constant 0 : i32
    return %c0_i32, %c0_i32_0 : i32, i32
  }
  func.func @transform_13(%arg0: i32) -> (i32, i32) {
    %c0_i32 = arith.constant 0 : i32
    %c0_i32_0 = arith.constant 0 : i32
    %c0_i32_1 = arith.constant 0 : i32
    return %c0_i32, %c0_i32_0 : i32, i32
  }
  func.func @transform_14(%arg0: i32) -> (i32, i32) {
    %c0_i32 = arith.constant 0 : i32
    %c0_i32_0 = arith.constant 0 : i32
    %c0_i32_1 = arith.constant 0 : i32
    return %c0_i32, %c0_i32_0 : i32, i32
  }
  func.func @transform_15(%arg0: i32) -> (i32, i32) {
    %c0_i32 = arith.constant 0 : i32
    %c0_i32_0 = arith.constant 0 : i32
    %c0_i32_1 = arith.constant 0 : i32
    return %c0_i32, %c0_i32_0 : i32, i32
  }
  func.func @transform_16(%arg0: i32) -> (i32, i32) {
    %c0_i32 = arith.constant 0 : i32
    %c0_i32_0 = arith.constant 0 : i32
    %c0_i32_1 = arith.constant 0 : i32
    return %c0_i32, %c0_i32_0 : i32, i32
  }
  func.func @transform_17(%arg0: i32) -> (i32, i32) {
    %c0_i32 = arith.constant 0 : i32
    %c0_i32_0 = arith.constant 0 : i32
    %c0_i32_1 = arith.constant 0 : i32
    return %c0_i32, %c0_i32_0 : i32, i32
  }
  func.func @transform_18(%arg0: i32) -> (i32, i32) {
    %c0_i32 = arith.constant 0 : i32
    %c0_i32_0 = arith.constant 0 : i32
    return %arg0, %c0_i32 : i32, i32
  }
}

</mosaic_0001>

<bundles_post_ra>
// kernel: tpu_custom_call.1
= control target key start
LH: loop header
LB: loop body
LE: loop exit
PB: predicated region body
PF: predicated region fallthrough
CT: control target
= control target key end

     0   :  { %s2343_s0 = inlined_call_operand.hbm [shape: f32[8,64], index: 0, kind: input, shape index: {}]   ;;  %s2344_s1 = inlined_call_operand.hbm [shape: bf16[64,512], index: 1, kind: input, shape index: {}]   ;;  %s2345_s2 = inlined_call_operand.vmem [shape: f32[1,128], index: 2, kind: input, shape index: {}]   ;;  %s2346_s3 = inlined_call_operand.hbm [shape: bf16[128,128], index: 3, kind: input, shape index: {}]   ;;  %s2347_s4 = inlined_call_operand.vmem [shape: f32[1,128], index: 4, kind: input, shape index: {}]   ;;  %s2348_s5 = inlined_call_operand.hbm [shape: bf16[128,384], index: 5, kind: input, shape index: {}]   ;;  %s2349_s6 = inlined_call_operand.vmem [shape: f32[1,384], index: 6, kind: input, shape index: {}]   ;;  %s2350_s7 = inlined_call_operand.hbm [shape: bf16[128,128], index: 7, kind: input, shape index: {}]   ;;  %s2351_s8 = inlined_call_operand.vmem [shape: f32[1,128], index: 8, kind: input, shape index: {}]   ;;  %s2352_s9 = inlined_call_operand.hbm [shape: bf16[128,128], index: 9, kind: input, shape index: {}]   ;;  %s2353_s10 = inlined_call_operand.vmem [shape: f32[1,128], index: 10, kind: input, shape index: {}]   ;;  %s2354_s11 = inlined_call_operand.hbm [shape: bf16[128,128], index: 11, kind: input, shape index: {}]   ;;  %s2355_s12 = inlined_call_operand.hbm [shape: bf16[256,128], index: 12, kind: input, shape index: {}]   ;;  %s2356_s13 = inlined_call_operand.vmem [shape: f32[1,128], index: 13, kind: input, shape index: {}]   ;;  %s2357_s14 = inlined_call_operand.hbm [shape: bf16[128,128], index: 14, kind: input, shape index: {}]   ;;  %s2358_s15 = inlined_call_operand.vmem [shape: f32[1,128], index: 15, kind: input, shape index: {}]   ;;  %s2359_s16 = inlined_call_operand.vmem [shape: f32[1,128], index: 16, kind: input, shape index: {}]   ;;  %s2360_s17 = inlined_call_operand.<no memory space> [shape: f32[1,1], index: 17, kind: input, shape index: {}]   ;;  %s2361_s18 = inlined_call_operand.hbm [shape: f32[8,128], index: 18, kind: output, shape index: {}]  }
   0x1   :  { %2362 = sst [smem:[#allocation25_spill]] %s2343_s0  ;;  %v23_v0 = vstv %s2360_s17 }
   0x2   :  { %2363 = sst [smem:[#allocation26_spill]] %s2344_s1  ;;  %24 = vst [vmem:[#allocation2] sm:$0x1] %v23_v0 }
   0x3   :  { %2364 = sst [smem:[#allocation27_spill]] %s2345_s2 }
   0x4   :  { %25 = vsyncpa [#allocation4], 0 }
   0x5   :  { %26 = vsyncpa [#allocation7], 0 }
   0x6   :  { %27 = vsyncpa [#allocation10], 0 }
   0x7   :  { %28 = vsyncpa [#allocation13], 0 }
   0x8   :  { %29 = vsyncpa [#allocation16], 0 }
   0x9   :  { %30 = vsyncpa [#allocation5], 0  ;;  %s2075_s29 = smov [#allocation6]  }
   0xa   :  { %s46_s30 = sshll.u32 %s2075_s29, 4  ;;  %s47_s30 = int_to_ptr.vmem [resolvable:$true] %s46_s30 }
   0xb   :  { %s1871_s0 = scalar_lea.vmem %s47_s30, 2048  ;;  %p1876_p1 = scmp.lt.s32.totalorder %s47_s30, %s47_s30 }
   0xc   :  { %p1872_p0 = scmp.ne.s32.totalorder %s47_s30, %s1871_s0  ;;  %p1877_p2 = scmp.lt.s32.totalorder %s1871_s0, %s1871_s0 }
   0xe   :  { %p1878_p3 = por %p1877_p2, %p1876_p1 }
  0x10   :  { %p1879_p4 = pnand %p1878_p3, %p1872_p0 }
  0x12   :  { %1882 = shalt.err (!%p1879_p4)
}
  0x13   :  { %s2076_s19 = smov 256   ;;  %s2077_s1 = smov 16  }
  0x14   :  { %s2365_s21 = sld [smem:[#allocation26_spill]]  ;;  %s2078_s22 = smov [#allocation9]  }
  0x15   :  { %s74_s2 = sshll.u32 %s2078_s22, 4  ;;  %s75_s2 = int_to_ptr.vmem [resolvable:$true] %s74_s2 }
  0x16   :  { %s1891_s23 = scalar_lea.vmem %s75_s2, 3072  ;;  %p1896_p6 = scmp.lt.s32.totalorder %s75_s2, %s75_s2 }
  0x17   :  { %p1892_p5 = scmp.ne.s32.totalorder %s75_s2, %s1891_s23  ;;  %p1897_p7 = scmp.lt.s32.totalorder %s1891_s23, %s1891_s23 }
  0x19   :  { %p1898_p8 = por %p1897_p7, %p1896_p6 }
  0x1a   :  { %52 = dma.hbm_to_vmem [thread:$0]  %s2365_s21, 2048, %s47_s30, [#allocation7], %s2076_s19, %s2076_s19, %s2077_s1  }
  0x1b   :  { %p1899_p9 = pnand %p1898_p8, %p1892_p5 }
  0x1d   :  { %1902 = shalt.err (!%p1899_p9)
}
  0x1e   :  { %s2079_s24 = smov 192   ;;  %s2080_s25 = smov 12  }
  0x1f   :  { %80 = dma.hbm_to_vmem [thread:$0]  %s2348_s5, 3072, %s75_s2, [#allocation10], %s2079_s24, %s2079_s24, %s2080_s25  }
  0x20   :  { %s2081_s28 = smov [#allocation12]   ;;  %s2082_s0 = smov [#allocation15]  }
  0x21   :  { %s102_s29 = sshll.u32 %s2081_s28, 4  ;;  %s128_s30 = sshll.u32 %s2082_s0, 4  ;;  %s103_s29 = int_to_ptr.vmem [resolvable:$true] %s102_s29  ;;  %s129_s30 = int_to_ptr.vmem [resolvable:$true] %s128_s30 }
  0x22   :  { %s1911_s19 = scalar_lea.vmem %s103_s29, 1024  ;;  %p1916_p11 = scmp.lt.s32.totalorder %s103_s29, %s103_s29 }
  0x23   :  { %p1912_p10 = scmp.ne.s32.totalorder %s103_s29, %s1911_s19  ;;  %p1917_p12 = scmp.lt.s32.totalorder %s1911_s19, %s1911_s19 }
  0x25   :  { %p1918_p13 = por %p1917_p12, %p1916_p11 }
  0x27   :  { %p1919_p0 = pnand %p1918_p13, %p1912_p10 }
  0x29   :  { %1922 = shalt.err (!%p1919_p0)
}
  0x2a   :  { %s2083_s1 = smov 64   ;;  %s2084_s17 = smov 4  }
  0x2b   :  { %108 = dma.hbm_to_vmem [thread:$0]  %s2352_s9, 1024, %s103_s29, [#allocation13], %s2083_s1, %s2083_s1, %s2084_s17  }
  0x2c   :  { %s1931_s21 = scalar_lea.vmem %s129_s30, 2048  ;;  %p1936_p2 = scmp.lt.s32.totalorder %s129_s30, %s129_s30 }
  0x2d   :  { %p1932_p1 = scmp.ne.s32.totalorder %s129_s30, %s1931_s21  ;;  %p1937_p3 = scmp.lt.s32.totalorder %s1931_s21, %s1931_s21 }
  0x2f   :  { %p1938_p4 = por %p1937_p3, %p1936_p2 }
  0x31   :  { %p1939_p5 = pnand %p1938_p4, %p1932_p1 }
  0x33   :  { %1942 = shalt.err (!%p1939_p5)
}
  0x34   :  { %134 = dma.hbm_to_vmem [thread:$0]  %s2355_s12, 2048, %s129_s30, [#allocation16], %s2083_s1, %s2083_s1, %s2084_s17  }
  0x35   :  { %s2085_s23 = smov [#allocation3]   ;;  %s2086_s25 = smov [#allocation8]  }
  0x36   :  { %s37_s24 = sshll.u32 %s2085_s23, 4  ;;  %s60_s26 = sshll.u32 %s2086_s25, 4  ;;  %s38_s24 = int_to_ptr.vmem [resolvable:$true] %s37_s24  ;;  %s61_s26 = int_to_ptr.vmem [resolvable:$true] %s60_s26 }
  0x37   :  { %s1951_s9 = scalar_lea.vmem %s38_s24, 128  ;;  %p1956_p7 = scmp.lt.s32.totalorder %s38_s24, %s38_s24 }
  0x38   :  { %p1952_p6 = scmp.ne.s32.totalorder %s38_s24, %s1951_s9  ;;  %p1957_p8 = scmp.lt.s32.totalorder %s1951_s9, %s1951_s9 }
  0x3a   :  { %p1958_p9 = por %p1957_p8, %p1956_p7 }
  0x3c   :  { %p1959_p10 = pnand %p1958_p9, %p1952_p6 }
  0x3e   :  { %1962 = shalt.err (!%p1959_p10)
}
  0x3f   :  { %s2366_s29 = sld [smem:[#allocation25_spill]]  ;;  %s1971_s0 = scalar_lea.vmem %s61_s26, 1024 }
  0x40   :  { %p1972_p11 = scmp.ne.s32.totalorder %s61_s26, %s1971_s0  ;;  %p1976_p12 = scmp.lt.s32.totalorder %s61_s26, %s61_s26 }
  0x41   :  { %p1977_p13 = scmp.lt.s32.totalorder %s1971_s0, %s1971_s0 }
  0x43   :  { %p1978_p0 = por %p1977_p13, %p1976_p12 }
  0x45   :  { %40 = dma.hbm_to_vmem [thread:$0]  %s2366_s29, 128, %s38_s24, [#allocation4]  }
  0x46   :  { %p1979_p1 = pnand %p1978_p0, %p1972_p11 }
  0x48   :  { %1982 = shalt.err (!%p1979_p1)
}
  0x49   :  { %66 = dma.hbm_to_vmem [thread:$0]  %s2346_s3, 1024, %s61_s26, [#allocation7], %s2083_s1, %s2083_s1, %s2084_s17  }
  0x4a   :  { %s2087_s19 = smov [#allocation11]   ;;  %s2088_s5 = smov [#allocation14]  }
  0x4b   :  { %s88_s20 = sshll.u32 %s2087_s19, 4  ;;  %s116_s21 = sshll.u32 %s2088_s5, 4  ;;  %s89_s20 = int_to_ptr.vmem [resolvable:$true] %s88_s20  ;;  %s117_s21 = int_to_ptr.vmem [resolvable:$true] %s116_s21 }
  0x4c   :  { %s1991_s22 = scalar_lea.vmem %s89_s20, 1024  ;;  %p1996_p3 = scmp.lt.s32.totalorder %s89_s20, %s89_s20 }
  0x4d   :  { %p1992_p2 = scmp.ne.s32.totalorder %s89_s20, %s1991_s22  ;;  %p1997_p4 = scmp.lt.s32.totalorder %s1991_s22, %s1991_s22 }
  0x4f   :  { %p1998_p5 = por %p1997_p4, %p1996_p3 }
  0x51   :  { %p1999_p6 = pnand %p1998_p5, %p1992_p2 }
  0x53   :  { %2002 = shalt.err (!%p1999_p6)
}
  0x54   :  { %94 = dma.hbm_to_vmem [thread:$0]  %s2350_s7, 1024, %s89_s20, [#allocation10], %s2083_s1, %s2083_s1, %s2084_s17  }
  0x55   :  { %s2011_s3 = scalar_lea.vmem %s117_s21, 1024  ;;  %p2016_p8 = scmp.lt.s32.totalorder %s117_s21, %s117_s21 }
  0x56   :  { %p2012_p7 = scmp.ne.s32.totalorder %s117_s21, %s2011_s3  ;;  %p2017_p9 = scmp.lt.s32.totalorder %s2011_s3, %s2011_s3 }
  0x58   :  { %p2018_p10 = por %p2017_p9, %p2016_p8 }
  0x5a   :  { %p2019_p11 = pnand %p2018_p10, %p2012_p7 }
  0x5c   :  { %2022 = shalt.err (!%p2019_p11)
}
  0x5d   :  { %122 = dma.hbm_to_vmem [thread:$0]  %s2354_s11, 1024, %s117_s21, [#allocation13], %s2083_s1, %s2083_s1, %s2084_s17  }
  0x5e   :  { %s2089_s26 = smov [#allocation17]  }
  0x5f   :  { %s142_s9 = sshll.u32 %s2089_s26, 4  ;;  %s143_s9 = int_to_ptr.vmem [resolvable:$true] %s142_s9 }
  0x60   :  { %s2031_s27 = scalar_lea.vmem %s143_s9, 1024  ;;  %p2036_p13 = scmp.lt.s32.totalorder %s143_s9, %s143_s9 }
  0x61   :  { %p2032_p12 = scmp.ne.s32.totalorder %s143_s9, %s2031_s27  ;;  %p2037_p0 = scmp.lt.s32.totalorder %s2031_s27, %s2031_s27 }
  0x63   :  { %p2038_p1 = por %p2037_p0, %p2036_p13 }
  0x65   :  { %p2039_p2 = pnand %p2038_p1, %p2032_p12 }
  0x67   :  { %2042 = shalt.err (!%p2039_p2)
}
  0x68   :  { %148 = dma.hbm_to_vmem [thread:$0]  %s2357_s14, 1024, %s143_s9, [#allocation16], %s2083_s1, %s2083_s1, %s2084_s17  }
  0x69   :  { %2063 = dma.done.wait [#allocation4], 128  }
  0x6a   :  { %2064 = vsyncadd [#allocation4], 4294967168 }
  0x6b   :  { %2065 = dma.done.wait [#allocation7], 3072  }
  0x6c   :  { %2066 = vsyncadd [#allocation7], 4294964224 }
  0x6d   :  { %2067 = dma.done.wait [#allocation10], 4096  }
  0x6e   :  { %2068 = vsyncadd [#allocation10], 4294963200 }
  0x6f   :  { %2069 = dma.done.wait [#allocation13], 2048  }
  0x70   :  { %2070 = vsyncadd [#allocation13], 4294965248 }
  0x71   :  { %2071 = dma.done.wait [#allocation16], 3072  }
  0x72   :  { %2072 = vsyncadd [#allocation16], 4294964224  ;;  %v2090_v1 = vmov 0   ;;  %v1749_v2 = vld [vmem:[#allocation6 + $0x64] ss:$16 sps:$4 sm:$0xff]   ;;  %v183_v10 = vld [vmem:[#allocation3] sm:$0xff] }
  0x73   :  { %317 = vmatprep.mubr.bf16.mxu0 %v2090_v1  ;;  %358 = vmatprep.mubr.bf16.mxu1 %v2090_v1  ;;  %v1751_v3 = vld [vmem:[#allocation6 + $0x60] ss:$16 sps:$4 sm:$0xff]   ;;  %v1752_v4 = vld [vmem:[#allocation6 + $0x44] ss:$16 sps:$4 sm:$0xff]   ;;  %v1761_v11 = vld [vmem:[#allocation8 + $0x38] sm:$0xff]   ;;  %v200_v12 = vpack.c.bf16 %v183_v10, %v183_v10  ;;  %vm281_vm0 = vcmask 523264  }
  0x74   :  { %1747 = vset.pattern.permute.xlu1 %v2090_v1  ;;  %1748 = vset.pattern.permute.xlu0 %v2090_v1  ;;  %v1754_v5 = vld [vmem:[#allocation6 + $0x40] ss:$16 sps:$4 sm:$0xff]   ;;  %v1755_v6 = vld [vmem:[#allocation6 + $0x24] ss:$16 sps:$4 sm:$0xff]   ;;  %v2091_v13 = vmov 0.0   ;;  %v1763_v15 = vld [vmem:[#allocation8 + $0x28] sm:$0xff]  }
  0x75   :  { %293 = vmatprep.subr.bf16.mxu0 %v1749_v2  ;;  %v1757_v7 = vld [vmem:[#allocation6 + $0x20] ss:$16 sps:$4 sm:$0xff]   ;;  %v1758_v8 = vld [vmem:[#allocation6 + $0x4] ss:$16 sps:$4 sm:$0xff]   ;;  %v1765_v17 = vld [vmem:[#allocation8 + $0x18] sm:$0xff]   ;;  %vm2092_vm1 = vmmov 0  }
  0x76   :  { %294 = vmatpush1.bf16.msra.mxu0 %v1751_v3  ;;  %v1760_v9 = vld [vmem:[#allocation6] ss:$16 sps:$4 sm:$0xff]   ;;  %v1767_v19 = vld [vmem:[#allocation8 + $0x8] sm:$0xff]   ;;  %v1789_v34 = vld [vmem:[#allocation9 + $0x78] ss:$12 sps:$4 sm:$0xff]   ;;  %s2367_s1 = sld [smem:[#allocation27_spill]] }
  0x77   :  { %295 = vmatprep.subr.bf16.mxu0 %v1752_v4  ;;  %v1762_v14 = vld [vmem:[#allocation8 + $0x30] sm:$0xff]   ;;  %v1764_v16 = vld [vmem:[#allocation8 + $0x20] sm:$0xff]   ;;  %v1769_v21 = vld [vmem:[#allocation6 + $0x6c] ss:$16 sps:$4 sm:$0xff]  }
  0x78   :  { %v1766_v18 = vld [vmem:[#allocation8 + $0x10] sm:$0xff]   ;;  %v1768_v20 = vld [vmem:[#allocation8] sm:$0xff]   ;;  %v1771_v22 = vld [vmem:[#allocation6 + $0x68] ss:$16 sps:$4 sm:$0xff]   ;;  %334 = vmatprep.subr.bf16.mxu1 %v1769_v21 }
  0x79   :  { %v1772_v23 = vld [vmem:[#allocation6 + $0x4c] ss:$16 sps:$4 sm:$0xff]   ;;  %335 = vmatpush1.bf16.msra.mxu1 %v1771_v22  ;;  %v1774_v24 = vld [vmem:[#allocation6 + $0x48] ss:$16 sps:$4 sm:$0xff]   ;;  %v1787_v31 = vld [vmem:[#allocation9 + $0x94] ss:$12 sps:$4 sm:$0xff]  }
  0x7a   :  { %296 = vmatpush1.bf16.msra.mxu0 %v1754_v5  ;;  %336 = vmatprep.subr.bf16.mxu1 %v1772_v23  ;;  %v1775_v25 = vld [vmem:[#allocation6 + $0x2c] ss:$16 sps:$4 sm:$0xff]   ;;  %v1777_v26 = vld [vmem:[#allocation6 + $0x28] ss:$16 sps:$4 sm:$0xff]   ;;  %v1795_v35 = vld [vmem:[#allocation9 + $0x64] ss:$12 sps:$4 sm:$0xff]  }
  0x7b   :  { %297 = vmatprep.subr.bf16.mxu0 %v1755_v6  ;;  %v1778_v27 = vld [vmem:[#allocation6 + $0xc] ss:$16 sps:$4 sm:$0xff]   ;;  %v1780_v28 = vld [vmem:[#allocation6 + $0x8] ss:$16 sps:$4 sm:$0xff]   ;;  %v1803_v39 = vld [vmem:[#allocation9 + $0x34] ss:$12 sps:$4 sm:$0xff]  }
  0x7c   :  { %v1783_v29 = vld [vmem:[#allocation9 + $0xac] ss:$12 sps:$4 sm:$0xff]   ;;  %v1781_v30 = vld [vmem:[#allocation9 + $0xa8] ss:$12 sps:$4 sm:$0xff]   ;;  %v1785_v32 = vld [vmem:[#allocation9 + $0x90] ss:$12 sps:$4 sm:$0xff]  }
  0x7d   :  { %337 = vmatpush1.bf16.msra.mxu1 %v1774_v24  ;;  %v1791_v33 = vld [vmem:[#allocation9 + $0x7c] ss:$12 sps:$4 sm:$0xff]   ;;  %v1793_v36 = vld [vmem:[#allocation9 + $0x60] ss:$12 sps:$4 sm:$0xff]   ;;  %v1805_v42 = vld [vmem:[#allocation9 + $0x18] ss:$12 sps:$4 sm:$0xff]  }
  0x7e   :  { %298 = vmatpush1.bf16.msra.mxu0 %v1757_v7  ;;  %338 = vmatprep.subr.bf16.mxu1 %v1775_v25  ;;  %v1799_v37 = vld [vmem:[#allocation9 + $0x4c] ss:$12 sps:$4 sm:$0xff]   ;;  %v1797_v38 = vld [vmem:[#allocation9 + $0x48] ss:$12 sps:$4 sm:$0xff]   ;;  %v1801_v40 = vld [vmem:[#allocation9 + $0x30] ss:$12 sps:$4 sm:$0xff]  }
  0x7f   :  { %299 = vmatprep.subr.bf16.mxu0 %v1758_v8  ;;  %v1807_v41 = vld [vmem:[#allocation9 + $0x1c] ss:$12 sps:$4 sm:$0xff]   ;;  %v1444_v43 = vld [vmem:[%s2367_s1] ss:$0 sm:$0xff]  ;;  %v1788_v52 = vld [vmem:[#allocation9 + $0x98] ss:$12 sps:$4 sm:$0xff]  }
  0x80   :  { %v1784_v49 = vld [vmem:[#allocation9 + $0xb0] ss:$12 sps:$4 sm:$0xff]   ;;  %v1792_v53 = vld [vmem:[#allocation9 + $0x80] ss:$12 sps:$4 sm:$0xff]   ;;  %v1796_v54 = vld [vmem:[#allocation9 + $0x68] ss:$12 sps:$4 sm:$0xff]  }
  0x81   :  { %339 = vmatpush1.bf16.msra.mxu1 %v1777_v26  ;;  %v1800_v55 = vld [vmem:[#allocation9 + $0x50] ss:$12 sps:$4 sm:$0xff]   ;;  %v1804_v56 = vld [vmem:[#allocation9 + $0x38] ss:$12 sps:$4 sm:$0xff]   ;;  %v1808_v57 = vld [vmem:[#allocation9 + $0x20] ss:$12 sps:$4 sm:$0xff]  }
  0x82   :  { %300 = vmatpush1.bf16.msra.mxu0 %v1760_v9  ;;  %340 = vmatprep.subr.bf16.mxu1 %v1778_v27  ;;  %v1811_v58 = vld [vmem:[#allocation9 + $0x4] ss:$12 sps:$4 sm:$0xff]   ;;  %v1809_v59 = vld [vmem:[#allocation9] ss:$12 sps:$4 sm:$0xff]   ;;  %v1812_v60 = vld [vmem:[#allocation9 + $0x8] ss:$12 sps:$4 sm:$0xff]  }
  0x83   :  { %1608 = vmatprep.subr.bf16.mxu0 %v2091_v13  ;;  %v1813_v5 = vld [vmem:[#allocation11 + $0x38] sm:$0xff]   ;;  %v1814_v9 = vld [vmem:[#allocation11 + $0x30] sm:$0xff]   ;;  %v1815_v10 = vld [vmem:[#allocation11 + $0x28] sm:$0xff]  }
  0x84   :  { %v1820_v23 = vld [vmem:[#allocation11] sm:$0xff]   ;;  %v1821_v24 = vld [vmem:[#allocation12 + $0x38] sm:$0xff]   ;;  %v1822_v25 = vld [vmem:[#allocation12 + $0x30] sm:$0xff]  }
  0x85   :  { %1442 = vmatmul.mubr.msk.bf16.vlgmr.msra.gmra.mxu0 %vm281_vm0, %v200_v12  ;;  %341 = vmatpush1.bf16.msra.mxu1 %v1780_v28  ;;  %v1823_v26 = vld [vmem:[#allocation12 + $0x28] sm:$0xff]   ;;  %v1824_v27 = vld [vmem:[#allocation12 + $0x20] sm:$0xff]   ;;  %v1825_v28 = vld [vmem:[#allocation12 + $0x18] sm:$0xff]  }
  0x86   :  { %1609 = vmatpush3.bf16.msra.mxu0 %v1761_v11  ;;  %1624 = vmatprep.mubr.msk.bf16.mxu0 %vm2092_vm1, %v2091_v13  ;;  %v1816_v11 = vld [vmem:[#allocation11 + $0x20] sm:$0xff]  }
  0x87   :  { %1610 = vmatprep.subr.bf16.mxu0 %v2091_v13  ;;  %649 = vmatprep.subr.bf16.mxu1 %v1783_v29  ;;  %v1826_v29 = vld [vmem:[#allocation12 + $0x10] sm:$0xff]  }
  0x88   :  { %1443 = vmatmul.mubr.msk.bf16.vlgmr.msra.gmra.mxu1 %vm281_vm0, %v200_v12  ;;  %v1817_v12 = vld [vmem:[#allocation11 + $0x18] sm:$0xff]  }
  0x89   :  { %650 = vmatpush1.bf16.msra.mxu1 %v1781_v30  ;;  %681 = vmatprep.mubr.bf16.mxu1 %v2090_v1  ;;  %v1445_v1 = vld [vmem:[%s2347_s4] ss:$0 sm:$0xff]  ;;  %v1827_v30 = vld [vmem:[#allocation12 + $0x8] sm:$0xff]  }
  0x8a   :  { %1611 = vmatpush3.bf16.msra.mxu0 %v1762_v14  ;;  %651 = vmatprep.subr.bf16.mxu1 %v1787_v31  ;;  %v1818_v14 = vld [vmem:[#allocation11 + $0x10] sm:$0xff]  }
  0x8b   :  { %1612 = vmatprep.subr.bf16.mxu0 %v2091_v13 }
  0x8d   :  { %652 = vmatpush1.bf16.msra.mxu1 %v1785_v32 }
  0x8e   :  { %1613 = vmatpush3.bf16.msra.mxu0 %v1763_v15  ;;  %653 = vmatprep.subr.bf16.mxu1 %v1791_v33  ;;  %v732_v15 = vlaneseq }
  0x8f   :  { %1614 = vmatprep.subr.bf16.mxu0 %v2091_v13 }
  0x91   :  { %654 = vmatpush1.bf16.msra.mxu1 %v1789_v34 }
  0x92   :  { %1615 = vmatpush3.bf16.msra.mxu0 %v1764_v16  ;;  %655 = vmatprep.subr.bf16.mxu1 %v1795_v35  ;;  %v733_v16 = vshrl.u32 %v732_v15, 7  ;;  %v1841_v15 = vld [vmem:[#allocation15 + $0x48] sm:$0xff]  }
  0x93   :  { %1616 = vmatprep.subr.bf16.mxu0 %v2091_v13 }
  0x94   :  { %v738_v21 = vsub.s32 1, %v733_v16  ;;  %v734_v31 = vsub.s32 0, %v733_v16 }
  0x95   :  { %656 = vmatpush1.bf16.msra.mxu1 %v1793_v36 }
  0x96   :  { %1617 = vmatpush3.bf16.msra.mxu0 %v1765_v17  ;;  %657 = vmatprep.subr.bf16.mxu1 %v1799_v37  ;;  %v742_v17 = vsub.s32 2, %v733_v16  ;;  %v1842_v16 = vld [vmem:[#allocation15 + $0x8] sm:$0xff]  }
  0x97   :  { %1618 = vmatprep.subr.bf16.mxu0 %v2091_v13 }
  0x99   :  { %658 = vmatpush1.bf16.msra.mxu1 %v1797_v38 }
  0x9a   :  { %1619 = vmatpush3.bf16.msra.mxu0 %v1766_v18  ;;  %659 = vmatprep.subr.bf16.mxu1 %v1803_v39  ;;  %v730_v18 = vld [vmem:[%s2349_s6] sm:$0x7] }
  0x9b   :  { %1620 = vmatprep.subr.bf16.mxu0 %v2091_v13  ;;  %v739_v22 = vrot.slane %v730_v18, %v738_v21  ;;  %v735_v32 = vrot.slane %v730_v18, %v734_v31  ;;  %v1851_v21 = vld [vmem:[#allocation14 + $0x8] sm:$0xff]  }
  0x9d   :  { %660 = vmatpush1.bf16.msra.mxu1 %v1801_v40 }
  0x9e   :  { %1621 = vmatpush3.bf16.msra.mxu0 %v1767_v19  ;;  %661 = vmatprep.subr.bf16.mxu1 %v1807_v41  ;;  %v1819_v19 = vld [vmem:[#allocation11 + $0x8] sm:$0xff]  }
  0x9f   :  { %1622 = vmatprep.subr.bf16.mxu0 %v2091_v13 }
  0xa1   :  { %662 = vmatpush1.bf16.msra.mxu1 %v1805_v42 }
  0xa2   :  { %1623 = vmatpush3.bf16.msra.mxu0 %v1768_v20  ;;  %663 = vmatprep.subr.bf16.mxu1 %v1811_v58  ;;  %v743_v20 = vrot.slane %v730_v18, %v742_v17  ;;  %v1843_v17 = vld [vmem:[#allocation15 + $0x40] sm:$0xff]  }
  0xa3   :  { %1628 = vmatprep.subr.bf16.mxu0 %v2091_v13  ;;  %v1844_v18 = vld [vmem:[#allocation15] sm:$0xff]  }
  0xa5   :  { %664 = vmatpush1.bf16.msra.mxu1 %v1809_v59 }
  0xa6   :  { %1648 = vmatprep.subr.bf16.mxu1 %v2091_v13 }
 0x145   :  { %v319_v44 = vpop.f32.mrf.mxu0 }
 0x146   :  { %v374_v45 = vadd.f32 %v1444_v43, %v319_v44 }
 0x147   :  { %v2258_v46 = vpop.f32.mrf.mxu0 }
 0x148   :  { %v375_v47 = vmax.f32 %v374_v45, 0.0  ;;  %v2271_v61 = vpop.f32.mrf.mxu1 }
 0x149   :  { %v323_v48 = vpop.f32.mrf.mxu0 }
 0x14a   :  { %v392_v50 = vpack.c.bf16 %v375_v47, %v375_v47  ;;  %v2273_v62 = vpop.f32.mrf.mxu1 }
 0x14b   :  { %v324_v51 = vpop.f32.mrf.mxu0 }
 0x14c   :  { %1625 = vmatmul.mubr.bf16.vlgmr.msra.gmra.mxu0 %v392_v50  ;;  %v364_v63 = vpop.f32.mrf.mxu1  ;;  %v1829_v50 = vld [vmem:[#allocation15 + $0x78] sm:$0xff]  }
 0x14d   :  { %1629 = vmatpush3.bf16.msra.mxu0 %v1784_v49  ;;  %1644 = vmatprep.mubr.msk.bf16.mxu0 %vm2092_vm1, %v2091_v13  ;;  %v1845_v51 = vld [vmem:[#allocation14 + $0x38] sm:$0xff]  }
 0x14e   :  { %1630 = vmatprep.subr.bf16.mxu0 %v2091_v13  ;;  %v365_v0 = vpop.f32.mrf.mxu1 }
 0x14f   :  { %v1830_v0 = vld [vmem:[#allocation15 + $0x38] sm:$0xff]  }
 0x151   :  { %1631 = vmatpush3.bf16.msra.mxu0 %v1788_v52  ;;  %v1846_v52 = vld [vmem:[#allocation14 + $0x30] sm:$0xff]  }
 0x152   :  { %1632 = vmatprep.subr.bf16.mxu0 %v2091_v13 }
 0x155   :  { %1633 = vmatpush3.bf16.msra.mxu0 %v1792_v53  ;;  %v1847_v53 = vld [vmem:[#allocation14 + $0x28] sm:$0xff]  }
 0x156   :  { %1634 = vmatprep.subr.bf16.mxu0 %v2091_v13 }
 0x159   :  { %1635 = vmatpush3.bf16.msra.mxu0 %v1796_v54  ;;  %v1848_v54 = vld [vmem:[#allocation14 + $0x20] sm:$0xff]  }
 0x15a   :  { %1636 = vmatprep.subr.bf16.mxu0 %v2091_v13 }
 0x15d   :  { %1637 = vmatpush3.bf16.msra.mxu0 %v1800_v55  ;;  %v1849_v55 = vld [vmem:[#allocation14 + $0x18] sm:$0xff]  }
 0x15e   :  { %1638 = vmatprep.subr.bf16.mxu0 %v2091_v13 }
 0x161   :  { %1639 = vmatpush3.bf16.msra.mxu0 %v1804_v56  ;;  %v1850_v56 = vld [vmem:[#allocation14 + $0x10] sm:$0xff]  }
 0x162   :  { %1640 = vmatprep.subr.bf16.mxu0 %v2091_v13 }
 0x165   :  { %1641 = vmatpush3.bf16.msra.mxu0 %v1808_v57  ;;  %v1478_v57 = vld [vmem:[%s2351_s8] ss:$0 sm:$0xff] }
 0x166   :  { %1642 = vmatprep.subr.bf16.mxu0 %v2091_v13 }
 0x169   :  { %1643 = vmatpush3.bf16.msra.mxu0 %v1812_v60 }
 0x16a   :  { %1668 = vmatprep.subr.bf16.mxu0 %v2091_v13 }
 0x20c   :  { %v482_v2 = vpop.f32.mrf.mxu0 }
 0x20d   :  { %v483_v3 = vadd.f32 %v1445_v1, %v482_v2  ;;  %v1831_v2 = vld [vmem:[#allocation15 + $0x70] sm:$0xff]  }
 0x20e   :  { %v1626_v4 = vpop.f32.mrf.mxu0 }
 0x20f   :  { %v520_v6 = vpack.c.bf16 %v483_v3, %v483_v3 }
 0x210   :  { %v485_v7 = vpop.f32.mrf.mxu0 }
 0x211   :  { %682 = vmatmul.mubr.bf16.vlgmr.msra.gmra.mxu1 %v520_v6  ;;  %1645 = vmatmul.mubr.bf16.vlgmr.msra.gmra.mxu0 %v520_v6  ;;  %v1833_v6 = vld [vmem:[#allocation15 + $0x68] sm:$0xff]  }
 0x212   :  { %v1627_v8 = vpop.f32.mrf.mxu0  ;;  %1649 = vmatpush3.bf16.msra.mxu1 %v1813_v5  ;;  %1664 = vmatprep.mubr.msk.bf16.mxu1 %vm2092_vm1, %v2091_v13  ;;  %v1832_v5 = vld [vmem:[#allocation15 + $0x30] sm:$0xff]   ;;  %v1834_v7 = vld [vmem:[#allocation15 + $0x28] sm:$0xff]  }
 0x213   :  { %1650 = vmatprep.subr.bf16.mxu1 %v2091_v13  ;;  %1684 = vmatprep.mubr.msk.bf16.mxu0 %vm2092_vm1, %v2091_v13  ;;  %v1835_v8 = vld [vmem:[#allocation15 + $0x60] sm:$0xff]  }
 0x214   :  { %1669 = vmatpush3.bf16.msra.mxu0 %v1821_v24 }
 0x215   :  { %1670 = vmatprep.subr.bf16.mxu0 %v2091_v13 }
 0x216   :  { %1651 = vmatpush3.bf16.msra.mxu1 %v1814_v9  ;;  %v1836_v9 = vld [vmem:[#allocation15 + $0x20] sm:$0xff]  }
 0x217   :  { %1652 = vmatprep.subr.bf16.mxu1 %v2091_v13 }
 0x218   :  { %1671 = vmatpush3.bf16.msra.mxu0 %v1822_v25 }
 0x219   :  { %1672 = vmatprep.subr.bf16.mxu0 %v2091_v13 }
 0x21a   :  { %1653 = vmatpush3.bf16.msra.mxu1 %v1815_v10  ;;  %v1837_v10 = vld [vmem:[#allocation15 + $0x58] sm:$0xff]  }
 0x21b   :  { %1654 = vmatprep.subr.bf16.mxu1 %v2091_v13 }
 0x21c   :  { %1673 = vmatpush3.bf16.msra.mxu0 %v1823_v26 }
 0x21d   :  { %1674 = vmatprep.subr.bf16.mxu0 %v2091_v13 }
 0x21e   :  { %1655 = vmatpush3.bf16.msra.mxu1 %v1816_v11  ;;  %v1838_v11 = vld [vmem:[#allocation15 + $0x18] sm:$0xff]  }
 0x21f   :  { %1656 = vmatprep.subr.bf16.mxu1 %v2091_v13 }
 0x220   :  { %1675 = vmatpush3.bf16.msra.mxu0 %v1824_v27 }
 0x221   :  { %1676 = vmatprep.subr.bf16.mxu0 %v2091_v13 }
 0x222   :  { %1657 = vmatpush3.bf16.msra.mxu1 %v1817_v12  ;;  %v1839_v12 = vld [vmem:[#allocation15 + $0x50] sm:$0xff]  }
 0x223   :  { %1658 = vmatprep.subr.bf16.mxu1 %v2091_v13 }
 0x224   :  { %1677 = vmatpush3.bf16.msra.mxu0 %v1825_v28 }
 0x225   :  { %1678 = vmatprep.subr.bf16.mxu0 %v2091_v13 }
 0x226   :  { %1659 = vmatpush3.bf16.msra.mxu1 %v1818_v14  ;;  %v1840_v14 = vld [vmem:[#allocation15 + $0x10] sm:$0xff]  }
 0x227   :  { %1660 = vmatprep.subr.bf16.mxu1 %v2091_v13 }
 0x228   :  { %1679 = vmatpush3.bf16.msra.mxu0 %v1826_v29  ;;  %v1853_v29 = vld [vmem:[#allocation17 + $0x38] sm:$0xff]  }
 0x229   :  { %1680 = vmatprep.subr.bf16.mxu0 %v2091_v13 }
 0x22a   :  { %1661 = vmatpush3.bf16.msra.mxu1 %v1819_v19 }
 0x22b   :  { %1662 = vmatprep.subr.bf16.mxu1 %v2091_v13 }
 0x22c   :  { %1681 = vmatpush3.bf16.msra.mxu0 %v1827_v30 }
 0x22d   :  { %1682 = vmatprep.subr.bf16.mxu0 %v2091_v13 }
 0x22e   :  { %1663 = vmatpush3.bf16.msra.mxu1 %v1820_v23  ;;  %v1487_v23 = vld [vmem:[%s2353_s10] ss:$0 sm:$0xff] }
 0x22f   :  { %1688 = vmatprep.subr.bf16.mxu1 %v2091_v13 }
 0x2d1   :  { %v683_v33 = vpop.f32.mrf.mxu1  ;;  %v724_v34 = vpop.f32.mrf.mxu0 }
 0x2d2   :  { %v684_v35 = vadd.f32 %v683_v33, %v2258_v46  ;;  %v725_v36 = vadd.f32 %v724_v34, %v2273_v62  ;;  %v1828_v46 = vld [vmem:[#allocation12] sm:$0xff]   ;;  %v1855_v33 = vld [vmem:[#allocation17 + $0x28] sm:$0xff]  }
 0x2d3   :  { %v685_v37 = vpop.f32.mrf.mxu1  ;;  %v1646_v38 = vpop.f32.mrf.mxu0  ;;  %1683 = vmatpush3.bf16.msra.mxu0 %v1828_v46  ;;  %v1856_v34 = vld [vmem:[#allocation17 + $0x20] sm:$0xff]  }
 0x2d4   :  { %v747_v39 = vadd.f32 %v735_v32, %v684_v35  ;;  %v749_v40 = vadd.f32 %v743_v20, %v725_v36  ;;  %v686_v41 = vadd.f32 %v685_v37, %v2271_v61  ;;  %1577 = vmatprep.subr.bf16.mxu0 %v1829_v50  ;;  %v1854_v32 = vld [vmem:[#allocation17 + $0x30] sm:$0xff]   ;;  %v1857_v35 = vld [vmem:[#allocation17 + $0x18] sm:$0xff]   ;;  %v1859_v37 = vld [vmem:[#allocation17 + $0x8] sm:$0xff]  }
 0x2d5   :  { %v687_v42 = vpop.f32.mrf.mxu1  ;;  %v727_v43 = vpop.f32.mrf.mxu0  ;;  %v1858_v36 = vld [vmem:[#allocation17 + $0x10] sm:$0xff]  }
 0x2d6   :  { %v750_v44 = vmax.f32 %v747_v39, 0.0  ;;  %v2303_v45 = vadd.f32 %v739_v22, %v686_v41  ;;  %v752_v60 = vmax.f32 %v749_v40, 0.0  ;;  %v1852_v22 = vld [vmem:[#allocation14] sm:$0xff]   ;;  %v1504_v40 = vld [vmem:[%s2356_s13] ss:$0 sm:$0xff] }
 0x2d7   :  { %v688_v47 = vpop.f32.mrf.mxu1  ;;  %v1647_v48 = vpop.f32.mrf.mxu0  ;;  %v1860_v39 = vld [vmem:[#allocation17] sm:$0xff]  }
 0x2d8   :  { %v769_v49 = vpack.c.bf16 %v750_v44, %v750_v44  ;;  %v1123_v3 = vpack.c.bf16 %v752_v60, %v752_v60  ;;  %v751_v19 = vmax.f32 %v2303_v45, 0.0 }
 0x2da   :  { %1665 = vmatmul.mubr.bf16.vlgmr.msra.gmra.mxu1 %v769_v49  ;;  %v1122_v20 = vpack.c.bf16 %v751_v19, %v751_v19 }
 0x2db   :  { %1704 = vmatprep.mubr.msk.bf16.mxu1 %vm2092_vm1, %v2091_v13  ;;  %1689 = vmatpush3.bf16.msra.mxu1 %v1845_v51 }
 0x2dc   :  { %1690 = vmatprep.subr.bf16.mxu1 %v2091_v13 }
 0x2df   :  { %1691 = vmatpush3.bf16.msra.mxu1 %v1846_v52 }
 0x2e0   :  { %1692 = vmatprep.subr.bf16.mxu1 %v2091_v13 }
 0x2e3   :  { %1693 = vmatpush3.bf16.msra.mxu1 %v1847_v53 }
 0x2e4   :  { %1694 = vmatprep.subr.bf16.mxu1 %v2091_v13 }
 0x2e7   :  { %1695 = vmatpush3.bf16.msra.mxu1 %v1848_v54 }
 0x2e8   :  { %1696 = vmatprep.subr.bf16.mxu1 %v2091_v13 }
 0x2eb   :  { %1697 = vmatpush3.bf16.msra.mxu1 %v1849_v55  ;;  %v1530_v55 = vld [vmem:[%s2359_s16] ss:$0 sm:$0xff] }
 0x2ec   :  { %1698 = vmatprep.subr.bf16.mxu1 %v2091_v13 }
 0x2ef   :  { %1699 = vmatpush3.bf16.msra.mxu1 %v1850_v56 }
 0x2f0   :  { %1700 = vmatprep.subr.bf16.mxu1 %v2091_v13 }
 0x2f3   :  { %1701 = vmatpush3.bf16.msra.mxu1 %v1851_v21 }
 0x2f4   :  { %1702 = vmatprep.subr.bf16.mxu1 %v2091_v13 }
 0x2f7   :  { %1703 = vmatpush3.bf16.msra.mxu1 %v1852_v22 }
 0x2f8   :  { %1708 = vmatprep.subr.bf16.mxu1 %v2091_v13 }
 0x39a   :  { %v859_v58 = vpop.f32.mrf.mxu1 }
 0x39b   :  { %v860_v59 = vadd.f32 %v1478_v57, %v859_v58 }
 0x39c   :  { %v1666_v61 = vpop.f32.mrf.mxu1 }
 0x39d   :  { %v865_v62 = vmax.f32 %v860_v59, 0.0  ;;  %v1531_v61 = vld [vmem:[#allocation2] ss:$0 sm:$0xff] }
 0x39e   :  { %v862_v63 = vpop.f32.mrf.mxu1 }
 0x39f   :  { %v882_v1 = vpack.c.bf16 %v865_v62, %v865_v62 }
 0x3a0   :  { %v1667_v4 = vpop.f32.mrf.mxu1 }
 0x3a1   :  { %1685 = vmatmul.mubr.bf16.vlgmr.msra.gmra.mxu0 %v882_v1 }
 0x3a2   :  { %1578 = vmatpush3.bf16.msra.mxu0 %v1830_v0  ;;  %1259 = vmatprep.mubr.bf16.mxu0 %v1123_v3 }
 0x3a3   :  { %1579 = vmatprep.subr.bf16.mxu0 %v1831_v2 }
 0x3a6   :  { %1580 = vmatpush3.bf16.msra.mxu0 %v1832_v5 }
 0x3a7   :  { %1581 = vmatprep.subr.bf16.mxu0 %v1833_v6 }
 0x3aa   :  { %1582 = vmatpush3.bf16.msra.mxu0 %v1834_v7 }
 0x3ab   :  { %1583 = vmatprep.subr.bf16.mxu0 %v1835_v8 }
 0x3ae   :  { %1584 = vmatpush3.bf16.msra.mxu0 %v1836_v9 }
 0x3af   :  { %1585 = vmatprep.subr.bf16.mxu0 %v1837_v10 }
 0x3b2   :  { %1586 = vmatpush3.bf16.msra.mxu0 %v1838_v11 }
 0x3b3   :  { %1587 = vmatprep.subr.bf16.mxu0 %v1839_v12 }
 0x3b6   :  { %1588 = vmatpush3.bf16.msra.mxu0 %v1840_v14 }
 0x3b7   :  { %1589 = vmatprep.subr.bf16.mxu0 %v1841_v15 }
 0x3ba   :  { %1590 = vmatpush3.bf16.msra.mxu0 %v1842_v16 }
 0x3bb   :  { %1591 = vmatprep.subr.bf16.mxu0 %v1843_v17 }
 0x3be   :  { %1592 = vmatpush3.bf16.msra.mxu0 %v1844_v18 }
 0x3c1   :  { %1260 = vmatmul.mubr.bf16.vlgmr.msra.gmra.mxu0 %v1122_v20 }
 0x461   :  { %v972_v24 = vpop.f32.mrf.mxu0 }
 0x462   :  { %v973_v25 = vadd.f32 %v1487_v23, %v972_v24 }
 0x463   :  { %v1686_v26 = vpop.f32.mrf.mxu0 }
 0x464   :  { %v978_v27 = vmax.f32 %v973_v25, 0.0 }
 0x465   :  { %v975_v28 = vpop.f32.mrf.mxu0 }
 0x466   :  { %v995_v30 = vpack.c.bf16 %v978_v27, %v978_v27 }
 0x467   :  { %v1687_v31 = vpop.f32.mrf.mxu0 }
 0x468   :  { %1705 = vmatmul.mubr.bf16.vlgmr.msra.gmra.mxu1 %v995_v30 }
 0x469   :  { %1709 = vmatpush3.bf16.msra.mxu1 %v1853_v29  ;;  %1724 = vmatprep.mubr.msk.bf16.mxu1 %vm2092_vm1, %v2091_v13 }
 0x46a   :  { %1710 = vmatprep.subr.bf16.mxu1 %v2091_v13 }
 0x46d   :  { %1711 = vmatpush3.bf16.msra.mxu1 %v1854_v32 }
 0x46e   :  { %1712 = vmatprep.subr.bf16.mxu1 %v2091_v13 }
 0x471   :  { %1713 = vmatpush3.bf16.msra.mxu1 %v1855_v33 }
 0x472   :  { %1714 = vmatprep.subr.bf16.mxu1 %v2091_v13 }
 0x475   :  { %1715 = vmatpush3.bf16.msra.mxu1 %v1856_v34 }
 0x476   :  { %1716 = vmatprep.subr.bf16.mxu1 %v2091_v13 }
 0x479   :  { %1717 = vmatpush3.bf16.msra.mxu1 %v1857_v35 }
 0x47a   :  { %1718 = vmatprep.subr.bf16.mxu1 %v2091_v13 }
 0x47d   :  { %1719 = vmatpush3.bf16.msra.mxu1 %v1858_v36 }
 0x47e   :  { %1720 = vmatprep.subr.bf16.mxu1 %v2091_v13 }
 0x481   :  { %v1593_v38 = vpop.f32.mrf.mxu0  ;;  %1721 = vmatpush3.bf16.msra.mxu1 %v1859_v37 }
 0x482   :  { %1722 = vmatprep.subr.bf16.mxu1 %v2091_v13  ;;  %v1521_v13 = vld [vmem:[%s2358_s15] ss:$0 sm:$0xff]  ;;  %s2093_s15 = smov [#allocation18]  }
 0x483   :  { %v1594_v41 = vpop.f32.mrf.mxu0  ;;  %s1413_s22 = sshll.u32 %s2093_s15, 4  ;;  %s1414_s22 = int_to_ptr.vmem [resolvable:$true] %s1413_s22 }
 0x484   :  { %v1595_v42 = vadd.f32 %v1594_v41, %v1593_v38  ;;  %s2043_s16 = scalar_lea.vmem %s1414_s22, 128  ;;  %p2048_p4 = scmp.lt.s32.totalorder %s1414_s22, %s1414_s22 }
 0x485   :  { %v1596_v43 = vpop.f32.mrf.mxu0  ;;  %1723 = vmatpush3.bf16.msra.mxu1 %v1860_v39  ;;  %p2044_p3 = scmp.ne.s32.totalorder %s1414_s22, %s2043_s16  ;;  %p2049_p5 = scmp.lt.s32.totalorder %s2043_s16, %s2043_s16 }
 0x486   :  { %v1262_v44 = vadd.f32 %v1595_v42, %v1504_v40 }
 0x487   :  { %v1597_v45 = vpop.f32.mrf.mxu0  ;;  %p2050_p6 = por %p2049_p5, %p2048_p4 }
 0x488   :  { %v1267_v47 = vmax.f32 %v1262_v44, 0.0 }
 0x489   :  { %p2051_p7 = pnand %p2050_p6, %p2044_p3 }
 0x48a   :  { %v1284_v48 = vpack.c.bf16 %v1267_v47, %v1267_v47 }
 0x48c   :  { %1725 = vmatmul.mubr.bf16.vlgmr.msra.gmra.mxu1 %v1284_v48 }
 0x528   :  { %v1078_v49 = vpop.f32.mrf.mxu1 }
 0x529   :  { %v1084_v60 = vmul.f32 %v1078_v49, %v1078_v49 }
 0x52a   :  { %v1706_v46 = vpop.f32.mrf.mxu1 }
 0x52c   :  { %v1081_v50 = vpop.f32.mrf.mxu1 }
 0x52e   :  { %v1707_v51 = vpop.f32.mrf.mxu1 }
 0x54c   :  { %v1374_v52 = vpop.f32.mrf.mxu1 }
 0x54d   :  { %v1375_v53 = vadd.f32 %v1521_v13, %v1374_v52 }
 0x54e   :  { %v1726_v54 = vpop.f32.mrf.mxu1 }
 0x54f   :  { %v1380_v56 = vmax.f32 %v1375_v53, 0.0 }
 0x550   :  { %v1377_v57 = vpop.f32.mrf.mxu1 }
 0x551   :  { %v1388_v58 = vmul.f32 %v1530_v55, %v1380_v56 }
 0x552   :  { %v1727_v59 = vpop.f32.mrf.mxu1 }
 0x553   :  { %1389 = vadd.xlane.f32.xlu0 %v1388_v58 }
 0x557   :  { %1085 = vadd.xlane.f32.xlu0 %v1084_v60 }
 0x5dc   :  { %v1390_v62 = vpop.xlane.xlu0 %1389 }
 0x5dd   :  { %v1398_v63 = vadd.f32 %v1531_v61, %v1390_v62 }
 0x5df   :  { %v1399_v0 = vmax.f32 %v1398_v63, 0.0 }
 0x5e0   :  { %v1086_v1 = vpop.xlane.xlu0 %1085 }
 0x5e1   :  { %1402 = vperm.xlu1 %1747, %v1399_v0   ;;  %v1087_v2 = vmax.f32 %v1086_v1, 1e-24 }
 0x5e3   :  { %1861 = vrsqrt.f32 %v1087_v2 }
 0x5f0   :  { %v1862_v3 = vpop.eup %1861 }
 0x5f1   :  { %v1089_v4 = vmul.f32 %v1862_v3, %v1078_v49 }
 0x65c   :  { %v1403_v5 = vpop.permute.xlu1 %1402 }
 0x65d   :  { %v1405_v6 = vmul.f32 %v1403_v5, %v1089_v4 }
 0x65f   :  { %1406 = vst [vmem:[#allocation18] sm:$0xff] %v1405_v6 }
 0x660   :  { %2054 = shalt.err (!%p2051_p7)
}
 0x661   :  { %1416 = dma.vmem_to_hbm [thread:$0]  %s1414_s22, 128, %s2361_s18, [#allocation5]  }
 0x662   :  { %2073 = dma.done.wait [#allocation5], 128  }
 0x663   :  { %2074 = vsyncadd [#allocation5], 4294967168 }
 0x664   :  { %1420 = vsyncpa [#allocation4], 1 }
 0x665   :  { %1421 = vsyncpa [#allocation7], 1 }
 0x666   :  { %1422 = vsyncpa [#allocation10], 1 }
 0x667   :  { %1423 = vsyncpa [#allocation13], 1 }
 0x668   :  { %1424 = vsyncpa [#allocation16], 1 }
 0x669   :  { %1425 = vsyncpa [#allocation5], 1 }

</bundles_post_ra>
